<compile_context>
chip_gen: v7x
topology: tpu7x:2x2x1
jax: 0.10.0
libtpu: 0.0.40
codegen_flags: <defaults>
</compile_context>

<pallas_src>
import functools

import jax
import jax.numpy as jnp
from jax.experimental import pallas as pl
from jax.experimental.pallas import tpu as pltpu


_LANE = 128


def _round_up(v, m):
    return ((v + m - 1) // m) * m


def _sublane(dtype):
    # sublane packing granularity per element width
    return {4: 8, 2: 16, 1: 32}[jnp.dtype(dtype).itemsize]


# ---------------------------------------------------------------------------
# Kernel: fused stack of LinearBlocks (+ optional residuals, + final bound).
# ---------------------------------------------------------------------------
def _fused_stack_kernel(*refs, activations, has_residual, n_valid, eps,
                        use_bound):
    num_layers = len(activations)

    x_ref = refs[0]
    idx = 1
    layer_refs = []
    for l in range(num_layers):
        wt_ref = refs[idx]
        idx += 1
        res_ref = None
        if has_residual[l]:
            res_ref = refs[idx]
            idx += 1
        layer_refs.append((wt_ref, res_ref))
    vec_ref = refs[idx]          # packed gamma/beta[/bound]  -> ONE DMA
    idx += 1
    o_ref = refs[idx]

    compute_dtype = x_ref.dtype
    n_pad = x_ref.shape[0]
    inv_n = 1.0 / float(n_valid)
    need_row_mask = n_valid < n_pad

    # Row mask is only needed to re-zero padded batch rows *between* layers
    # (the BN shift repopulates them); hoisted out of the layer loop.
    if need_row_mask:
        row_ids = jax.lax.broadcasted_iota(jnp.int32, (n_pad, 1), 0)
        row_mask = (row_ids < n_valid).astype(jnp.float32)

    vecs = vec_ref[...]          # (2*L[+1], max_out_p) f32

    h = x_ref[...]               # native bf16 tile feeds the MXU directly
    y = None
    for l, (wt_ref, res_ref) in enumerate(layer_refs):
        out_p = wt_ref.shape[1]

        # Linear WITHOUT bias (bias cancels exactly in training-mode BN).
        y = jnp.dot(h, wt_ref[...], preferred_element_type=jnp.float32)

        # BatchNorm1d, training-mode batch stats, single elementwise pass.
        # Padded rows/cols of y are exactly zero (zero-padded x rows, zero W
        # columns, no bias) => unmasked sums already equal the valid-row sums.
        mean = jnp.sum(y, axis=0, keepdims=True) * inv_n
        e2 = jnp.sum(y * y, axis=0, keepdims=True) * inv_n
        var = jnp.maximum(e2 - mean * mean, 0.0)
        gamma = vecs[2 * l:2 * l + 1, :out_p]
        beta = vecs[2 * l + 1:2 * l + 2, :out_p]
        scale = gamma * jax.lax.rsqrt(var + eps)   # zero on padded columns
        shift = beta - mean * scale
        y = y * scale + shift

        if res_ref is not None:  # LinearBlock.forward(x, x0): x = x + x0
            y = y + res_ref[...].astype(jnp.float32)   # residual ships as bf16

        act = activations[l]
        if act == "relu":
            y = jnp.maximum(y, 0.0)
        elif act == "tanh":
            y = jnp.tanh(y)
        else:
            raise NotImplementedError(
                "Not implement this type of activation function!")

        if l + 1 < num_layers:
            if need_row_mask:    # re-zero padded rows once, after activation
                y = y * row_mask
            h = y.astype(compute_dtype)

    if use_bound:                # forward_nn: x = x * self.bound
        y = y * vecs[2 * num_layers:2 * num_layers + 1, :y.shape[1]]
    o_ref[...] = y.astype(o_ref.dtype)


# ---------------------------------------------------------------------------
# Parameter construction (transpose / pad / pack hoisted out of the call path)
# ---------------------------------------------------------------------------
def make_linear_block_params(key, in_features, out_features, activation="relu",
                             compute_dtype=jnp.bfloat16):
    """Linear (kaiming_uniform-like init) + BatchNorm1d params, pre-transposed
    and pre-padded to 128-lane tiles; weights stored in the MXU compute dtype.
    The Linear bias is kept only for the pure-JAX reference — the kernel drops
    it because it cancels exactly in the training-mode BatchNorm that follows."""
    kw, kb = jax.random.split(key)
    bnd = (1.0 / in_features) ** 0.5
    w = jax.random.uniform(kw, (out_features, in_features), jnp.float32, -bnd, bnd)
    b = jax.random.uniform(kb, (out_features,), jnp.float32, -bnd, bnd)
    g = jnp.ones((out_features,), jnp.float32)     # BatchNorm1d.weight
    be = jnp.zeros((out_features,), jnp.float32)   # BatchNorm1d.bias

    in_p = _round_up(in_features, _LANE)
    out_p = _round_up(out_features, _LANE)
    wt = jnp.zeros((in_p, out_p), compute_dtype).at[:in_features, :out_features].set(
        w.T.astype(compute_dtype))
    # gamma zero-padded beyond out_features => scale == 0 on padded columns.
    g2 = jnp.zeros((1, out_p), jnp.float32).at[:, :out_features].set(g)
    be2 = jnp.zeros((1, out_p), jnp.float32).at[:, :out_features].set(be)
    return {"wt": wt, "bias": b, "gamma": g2, "beta": be2,
            "in_features": in_features, "out_features": out_features,
            "activation": activation}


def pack_stack(layers, bound=None):
    """One-time packing of a LinearBlock stack for the fused kernel.
    All per-layer (1, out_p) vectors (gamma, beta) plus the optional bound are
    concatenated into ONE f32 operand (single DMA); the Linear bias is dropped
    entirely (it cancels in training-mode BN)."""
    max_out_p = max(p["wt"].shape[1] for p in layers)
    rows = []
    for p in layers:
        out_p = p["wt"].shape[1]
        rows.append(jnp.zeros((1, max_out_p), jnp.float32).at[:, :out_p].set(p["gamma"]))
        rows.append(jnp.zeros((1, max_out_p), jnp.float32).at[:, :out_p].set(p["beta"]))
    use_bound = bound is not None
    if use_bound:
        out_last = layers[-1]["out_features"]
        rows.append(jnp.zeros((1, max_out_p), jnp.float32).at[:, :out_last].set(
            jnp.asarray(bound, jnp.float32).reshape(1, -1)))
    return {"layers": tuple(layers),
            "vec": jnp.concatenate(rows, axis=0),
            "use_bound": use_bound}


# ---------------------------------------------------------------------------
# Wrapper: one pallas_call for the whole LinearBlock stack.
# ---------------------------------------------------------------------------
def fused_linear_block_stack(x, stack, *, residuals=None, eps=1e-5):
    layers = stack["layers"]
    num_layers = len(layers)
    if residuals is None:
        residuals = [None] * num_layers
    assert len(residuals) == num_layers
    compute_dtype = layers[0]["wt"].dtype

    n, in0 = x.shape
    assert in0 == layers[0]["in_features"]
    for l in range(num_layers - 1):
        assert layers[l]["wt"].shape[1] == layers[l + 1]["wt"].shape[0]

    sub = _sublane(compute_dtype)
    n_pad = _round_up(max(n, sub), sub)
    in0_p = layers[0]["wt"].shape[0]
    out_last = layers[-1]["out_features"]
    out_last_p = layers[-1]["wt"].shape[1]

    # Pad batch + input features once; cast to the MXU compute dtype once.
    xp = jnp.zeros((n_pad, in0_p), compute_dtype).at[:n, :in0].set(
        x.astype(compute_dtype))

    operands = [xp]
    activations = []
    has_residual = []
    for p, r in zip(layers, residuals):
        operands.append(p["wt"])
        activations.append(p["activation"])
        has_residual.append(r is not None)
        if r is not None:   # residual ships in bf16: half HBM traffic / VMEM
            out_p = p["wt"].shape[1]
            rp = jnp.zeros((n_pad, out_p), compute_dtype).at[
                :n, :p["out_features"]].set(r.astype(compute_dtype))
            operands.append(rp)
    operands.append(stack["vec"])   # packed gamma/beta[/bound]

    def full_spec(arr):
        return pl.BlockSpec(arr.shape, lambda: (0,) * arr.ndim)

    kernel = functools.partial(
        _fused_stack_kernel,
        activations=tuple(activations),
        has_residual=tuple(has_residual),
        n_valid=n, eps=eps, use_bound=stack["use_bound"])

    # VMEM budget: grid=() => nothing is double-buffered, so size as
    # 1x operands + output + headroom; cap below the generation's physical
    # per-core VMEM (64 MiB on v7x, 128 MiB on v5e/v6e) leaving slack for
    # compiler-internal scratch.
    total_bytes = sum(int(op.size) * op.dtype.itemsize for op in operands)
    total_bytes += n_pad * out_last_p * 4           # f32 output
    try:
        vmem_cap = int(getattr(pltpu.get_tpu_info(), "vmem_capacity_bytes",
                               64 << 20))
    except Exception:
        vmem_cap = 64 << 20
    vmem_limit = max(8 << 20, total_bytes + (2 << 20))
    vmem_limit = int(min(vmem_limit, vmem_cap - (8 << 20)))

    out = pl.pallas_call(
        kernel,
        out_shape=jax.ShapeDtypeStruct((n_pad, out_last_p), jnp.float32),
        grid_spec=pltpu.PrefetchScalarGridSpec(
            num_scalar_prefetch=0,
            grid=(),
            in_specs=[full_spec(op) for op in operands],
            out_specs=pl.BlockSpec((n_pad, out_last_p), lambda: (0, 0)),
        ),
        compiler_params=pltpu.CompilerParams(vmem_limit_bytes=vmem_limit),
    )(*operands)

    return out[:n, :out_last]


def linear_block(x, params, x0=None, *, eps=1e-5):
    """Single LinearBlock.forward(x, x0) via the fused kernel machinery."""
    return fused_linear_block_stack(x, pack_stack([params]),
                                    residuals=[x0], eps=eps)


# ---------------------------------------------------------------------------
# Pure-JAX reference (same quantized weights, but WITH the Linear bias and the
# two-pass variance — i.e. the literal PyTorch forward) for sanity checking.
# ---------------------------------------------------------------------------
def _reference_stack(x, layers, *, residuals=None, bound=None, eps=1e-5):
    compute_dtype = layers[0]["wt"].dtype
    if residuals is None:
        residuals = [None] * len(layers)
    h = x.astype(compute_dtype)
    y = None
    for l, p in enumerate(layers):
        i_f, o_f = p["in_features"], p["out_features"]
        wt = p["wt"][:i_f, :o_f]
        y = jnp.dot(h, wt, preferred_element_type=jnp.float32) + p["bias"][None, :]
        mean = jnp.mean(y, axis=0, keepdims=True)
        var = jnp.mean((y - mean) ** 2, axis=0, keepdims=True)
        y = (y - mean) * jax.lax.rsqrt(var + eps) * p["gamma"][:, :o_f] + p["beta"][:, :o_f]
        if residuals[l] is not None:
            y = y + residuals[l].astype(jnp.float32)
        y = jnp.maximum(y, 0.0) if p["activation"] == "relu" else jnp.tanh(y)
        if l + 1 < len(layers):
            h = y.astype(compute_dtype)
    if bound is not None:
        y = y * jnp.asarray(bound, jnp.float32)
    return y


if __name__ == "__main__":
    key = jax.random.PRNGKey(0)
    k0, k3, kx, kres, kh, kblk = jax.random.split(key, 6)

    # IterativeGNNModel NN trunk:
    #   block0 = LinearBlock(input_length=8 -> 80, relu)
    #   block3 = LinearBlock(80 -> output_length=2, tanh)
    #   x = x * bound([1.0, 0.8])
    # block1/block2 (ConvResidualBlock / MyTransformerConv) are undefined in
    # the spec and omitted (see TODO(synk) at top of file).
    N, IN, HID, OUT = 16, 8, 80, 2
    block0 = make_linear_block_params(k0, IN, HID, "relu")
    block3 = make_linear_block_params(k3, HID, OUT, "tanh")
    bound = jnp.array([1.0, 0.8], jnp.float32)

    # One-time packing (gamma/beta/bound -> single operand), out of call path.
    trunk = pack_stack([block0, block3], bound=bound)

    x = jax.random.normal(kx, (N, IN), jnp.float32)

    out = jax.block_until_ready(fused_linear_block_stack(x, trunk))
    assert out.shape == (N, OUT)

    ref = _reference_stack(x, [block0, block3], bound=bound)
    assert jnp.allclose(out, ref, atol=2e-2, rtol=2e-2), float(
        jnp.max(jnp.abs(out - ref)))

    # LinearBlock residual path (x0 given) — residual operand only exists here
    # and is shipped in bf16.
    blk = make_linear_block_params(kblk, HID, HID, "relu")
    h = jax.random.normal(kh, (N, HID), jnp.float32)
    h0 = jax.random.normal(kres, (N, HID), jnp.float32)
    out_res = jax.block_until_ready(linear_block(h, blk, x0=h0))
    ref_res = _reference_stack(h, [blk], residuals=[h0])
    assert out_res.shape == (N, HID)
    assert jnp.allclose(out_res, ref_res, atol=2e-2, rtol=2e-2), float(
        jnp.max(jnp.abs(out_res - ref_res)))

    print("KERNEL_OK")
</pallas_src>

<mosaic_0001>
module attributes {stable_mosaic.version = 11 : i64} {
  func.func @_fused_stack_kernel(%arg0: memref<16x128xbf16, #tpu.memory_space<vmem>>, %arg1: memref<128x128xbf16, #tpu.memory_space<vmem>>, %arg2: memref<128x128xbf16, #tpu.memory_space<vmem>>, %arg3: memref<5x128xf32, #tpu.memory_space<vmem>>, %arg4: memref<16x128xf32, #tpu.memory_space<vmem>>) attributes {dimension_semantics = [], scalar_prefetch = 0 : i64, scratch_operands = 0 : i64, tpu.core_type = #tpu.core_type<tc>} {
    %c0 = arith.constant 0 : index
    %c0_0 = arith.constant 0 : index
    %0 = vector.load %arg3[%c0, %c0_0] : memref<5x128xf32, #tpu.memory_space<vmem>>, vector<5x128xf32>
    %c0_1 = arith.constant 0 : index
    %c0_2 = arith.constant 0 : index
    %1 = vector.load %arg0[%c0_1, %c0_2] : memref<16x128xbf16, #tpu.memory_space<vmem>>, vector<16x128xbf16>
    %c0_3 = arith.constant 0 : index
    %c0_4 = arith.constant 0 : index
    %2 = vector.load %arg1[%c0_3, %c0_4] : memref<128x128xbf16, #tpu.memory_space<vmem>>, vector<128x128xbf16>
    %cst = arith.constant dense<0.000000e+00> : vector<16x128xf32>
    %3 = tpu.matmul %1, %2, %cst {dimension_numbers = #tpu.dot_dimension_numbers<[1], [0], [0], [1], [0, 0, 1, 1], [], []>} : vector<16x128xbf16>, vector<128x128xbf16>, vector<16x128xf32> -> vector<16x128xf32>
    %cst_5 = arith.constant dense<0.000000e+00> : vector<128xf32>
    %4 = vector.multi_reduction <add>, %3, %cst_5 [0] : vector<16x128xf32> to vector<128xf32>
    %5 = vector.shape_cast %4 : vector<128xf32> to vector<1x128xf32>
    %cst_6 = arith.constant 6.250000e-02 : f32
    %6 = vector.broadcast %cst_6 : f32 to vector<1x128xf32>
    %7 = arith.mulf %5, %6 : vector<1x128xf32>
    %8 = arith.mulf %3, %3 : vector<16x128xf32>
    %cst_7 = arith.constant dense<0.000000e+00> : vector<128xf32>
    %9 = vector.multi_reduction <add>, %8, %cst_7 [0] : vector<16x128xf32> to vector<128xf32>
    %10 = vector.shape_cast %9 : vector<128xf32> to vector<1x128xf32>
    %cst_8 = arith.constant 6.250000e-02 : f32
    %11 = vector.broadcast %cst_8 : f32 to vector<1x128xf32>
    %12 = arith.mulf %10, %11 : vector<1x128xf32>
    %13 = arith.mulf %7, %7 : vector<1x128xf32>
    %14 = arith.subf %12, %13 : vector<1x128xf32>
    %cst_9 = arith.constant 0.000000e+00 : f32
    %15 = vector.broadcast %cst_9 : f32 to vector<1x128xf32>
    %16 = arith.maximumf %14, %15 : vector<1x128xf32>
    %17 = vector.extract_strided_slice %0 {offsets = [0, 0], sizes = [1, 128], strides = [1, 1]} : vector<5x128xf32> to vector<1x128xf32>
    %18 = vector.extract_strided_slice %0 {offsets = [1, 0], sizes = [1, 128], strides = [1, 1]} : vector<5x128xf32> to vector<1x128xf32>
    %cst_10 = arith.constant 9.99999974E-6 : f32
    %19 = vector.broadcast %cst_10 : f32 to vector<1x128xf32>
    %20 = arith.addf %16, %19 : vector<1x128xf32>
    %21 = math.rsqrt %20 : vector<1x128xf32>
    %22 = arith.mulf %17, %21 : vector<1x128xf32>
    %23 = arith.mulf %7, %22 : vector<1x128xf32>
    %24 = arith.subf %18, %23 : vector<1x128xf32>
    %25 = vector.broadcast %22 : vector<1x128xf32> to vector<16x128xf32>
    %26 = arith.mulf %3, %25 : vector<16x128xf32>
    %27 = vector.broadcast %24 : vector<1x128xf32> to vector<16x128xf32>
    %28 = arith.addf %26, %27 : vector<16x128xf32>
    %cst_11 = arith.constant 0.000000e+00 : f32
    %29 = vector.broadcast %cst_11 : f32 to vector<16x128xf32>
    %30 = arith.maximumf %28, %29 : vector<16x128xf32>
    %31 = arith.truncf %30 : vector<16x128xf32> to vector<16x128xbf16>
    %c0_12 = arith.constant 0 : index
    %c0_13 = arith.constant 0 : index
    %32 = vector.load %arg2[%c0_12, %c0_13] : memref<128x128xbf16, #tpu.memory_space<vmem>>, vector<128x128xbf16>
    %cst_14 = arith.constant dense<0.000000e+00> : vector<16x128xf32>
    %33 = tpu.matmul %31, %32, %cst_14 {dimension_numbers = #tpu.dot_dimension_numbers<[1], [0], [0], [1], [0, 0, 1, 1], [], []>} : vector<16x128xbf16>, vector<128x128xbf16>, vector<16x128xf32> -> vector<16x128xf32>
    %cst_15 = arith.constant dense<0.000000e+00> : vector<128xf32>
    %34 = vector.multi_reduction <add>, %33, %cst_15 [0] : vector<16x128xf32> to vector<128xf32>
    %35 = vector.shape_cast %34 : vector<128xf32> to vector<1x128xf32>
    %cst_16 = arith.constant 6.250000e-02 : f32
    %36 = vector.broadcast %cst_16 : f32 to vector<1x128xf32>
    %37 = arith.mulf %35, %36 : vector<1x128xf32>
    %38 = arith.mulf %33, %33 : vector<16x128xf32>
    %cst_17 = arith.constant dense<0.000000e+00> : vector<128xf32>
    %39 = vector.multi_reduction <add>, %38, %cst_17 [0] : vector<16x128xf32> to vector<128xf32>
    %40 = vector.shape_cast %39 : vector<128xf32> to vector<1x128xf32>
    %cst_18 = arith.constant 6.250000e-02 : f32
    %41 = vector.broadcast %cst_18 : f32 to vector<1x128xf32>
    %42 = arith.mulf %40, %41 : vector<1x128xf32>
    %43 = arith.mulf %37, %37 : vector<1x128xf32>
    %44 = arith.subf %42, %43 : vector<1x128xf32>
    %cst_19 = arith.constant 0.000000e+00 : f32
    %45 = vector.broadcast %cst_19 : f32 to vector<1x128xf32>
    %46 = arith.maximumf %44, %45 : vector<1x128xf32>
    %47 = vector.extract_strided_slice %0 {offsets = [2, 0], sizes = [1, 128], strides = [1, 1]} : vector<5x128xf32> to vector<1x128xf32>
    %48 = vector.extract_strided_slice %0 {offsets = [3, 0], sizes = [1, 128], strides = [1, 1]} : vector<5x128xf32> to vector<1x128xf32>
    %cst_20 = arith.constant 9.99999974E-6 : f32
    %49 = vector.broadcast %cst_20 : f32 to vector<1x128xf32>
    %50 = arith.addf %46, %49 : vector<1x128xf32>
    %51 = math.rsqrt %50 : vector<1x128xf32>
    %52 = arith.mulf %47, %51 : vector<1x128xf32>
    %53 = arith.mulf %37, %52 : vector<1x128xf32>
    %54 = arith.subf %48, %53 : vector<1x128xf32>
    %55 = vector.broadcast %52 : vector<1x128xf32> to vector<16x128xf32>
    %56 = arith.mulf %33, %55 : vector<16x128xf32>
    %57 = vector.broadcast %54 : vector<1x128xf32> to vector<16x128xf32>
    %58 = arith.addf %56, %57 : vector<16x128xf32>
    %59 = math.tanh %58 : vector<16x128xf32>
    %60 = vector.extract_strided_slice %0 {offsets = [4, 0], sizes = [1, 128], strides = [1, 1]} : vector<5x128xf32> to vector<1x128xf32>
    %61 = vector.broadcast %60 : vector<1x128xf32> to vector<16x128xf32>
    %62 = arith.mulf %59, %61 : vector<16x128xf32>
    %c0_21 = arith.constant 0 : index
    %c0_22 = arith.constant 0 : index
    %63 = vector.load %arg4[%c0_21, %c0_22] : memref<16x128xf32, #tpu.memory_space<vmem>>, vector<16x128xf32>
    tpu.vector_store %arg4[%c0_21, %c0_22], %62 {strides = array<i32>} : memref<16x128xf32, #tpu.memory_space<vmem>>, vector<16x128xf32>,
    return
  }
}

</mosaic_0001>

<bundles_post_ra>
// kernel: tpu_custom_call.1
= control target key start
LH: loop header
LB: loop body
LE: loop exit
PB: predicated region body
PF: predicated region fallthrough
CT: control target
= control target key end

     0   :  { %9 = vsyncpa [#allocation3], 0  ;;  %s705_s0 = inlined_call_operand.hbm [shape: bf16[16,128], index: 0, kind: input, shape index: {}]   ;;  %s706_s1 = inlined_call_operand.hbm [shape: bf16[128,128], index: 1, kind: input, shape index: {}]   ;;  %s707_s2 = inlined_call_operand.hbm [shape: bf16[128,128], index: 2, kind: input, shape index: {}]   ;;  %s708_s3 = inlined_call_operand.vmem [shape: f32[5,128], index: 3, kind: input, shape index: {}]   ;;  %s709_s4 = inlined_call_operand.hbm [shape: f32[16,128], index: 4, kind: output, shape index: {}]  }
   0x1   :  { %10 = vsyncpa [#allocation6], 0 }
   0x2   :  { %11 = vsyncpa [#allocation4], 0  ;;  %s596_s15 = smov [#allocation5]   ;;  %s597_s17 = smov [#allocation2]  }
   0x3   :  { %s29_s16 = sshll.u32 %s596_s15, 4  ;;  %s17_s18 = sshll.u32 %s597_s17, 4  ;;  %s30_s16 = int_to_ptr.vmem [resolvable:$true] %s29_s16  ;;  %s631_s18 = int_to_ptr.vmem [resolvable:$true] %s17_s18 }
   0x4   :  { %s502_s21 = scalar_lea.hbm %s706_s1, 1024 }
   0x5   :  { %p503_p0 = scmp.ne.s32.totalorder %s706_s1, %s502_s21  ;;  %p506_p1 = scmp.lt.u32.totalorder %s502_s21, %s706_s1 }
   0x7   :  { %p508_p2 = pnand %p506_p1, %p503_p0 }
   0x9   :  { %511 = shalt.err (!%p508_p2)
}
   0xa   :  { %s512_s26 = scalar_lea.vmem %s30_s16, 1024  ;;  %p517_p4 = scmp.lt.s32.totalorder %s30_s16, %s30_s16 }
   0xb   :  { %p513_p3 = scmp.ne.s32.totalorder %s30_s16, %s512_s26  ;;  %p518_p5 = scmp.lt.s32.totalorder %s512_s26, %s512_s26 }
   0xd   :  { %p519_p6 = por %p518_p5, %p517_p4 }
   0xf   :  { %p520_p7 = pnand %p519_p6, %p513_p3 }
  0x11   :  { %523 = shalt.err (!%p520_p7)
}
  0x12   :  { %s598_s27 = smov 64   ;;  %s599_s28 = smov 4  }
  0x13   :  { %35 = dma.hbm_to_vmem [thread:$0]  %s706_s1, 1024, %s30_s16, [#allocation6], %s598_s27, %s598_s27, %s599_s28  }
  0x14   :  { %s524_s7 = scalar_lea.hbm %s705_s0, 128 }
  0x15   :  { %p525_p8 = scmp.ne.s32.totalorder %s705_s0, %s524_s7  ;;  %p528_p9 = scmp.lt.u32.totalorder %s524_s7, %s705_s0 }
  0x17   :  { %p530_p10 = pnand %p528_p9, %p525_p8 }
  0x19   :  { %533 = shalt.err (!%p530_p10)
}
  0x1a   :  { %s534_s12 = scalar_lea.vmem %s631_s18, 128  ;;  %p539_p12 = scmp.lt.s32.totalorder %s631_s18, %s631_s18 }
  0x1b   :  { %p535_p11 = scmp.ne.s32.totalorder %s631_s18, %s534_s12  ;;  %p540_p13 = scmp.lt.s32.totalorder %s534_s12, %s534_s12 }
  0x1d   :  { %p541_p0 = por %p540_p13, %p539_p12 }
  0x1f   :  { %p542_p1 = pnand %p541_p0, %p535_p11 }
  0x21   :  { %545 = shalt.err (!%p542_p1)
}
  0x22   :  { %23 = dma.hbm_to_vmem [thread:$0]  %s705_s0, 128, %s631_s18, [#allocation3], %s598_s27, %s598_s27, %s599_s28  }
  0x23   :  { %s600_s14 = smov [#allocation7]   ;;  %s546_s19 = scalar_lea.hbm %s707_s2, 1024 }
  0x24   :  { %s41_s15 = sshll.u32 %s600_s14, 4  ;;  %p547_p2 = scmp.ne.s32.totalorder %s707_s2, %s546_s19  ;;  %s42_s15 = int_to_ptr.vmem [resolvable:$true] %s41_s15 }
  0x25   :  { %p550_p3 = scmp.lt.u32.totalorder %s546_s19, %s707_s2 }
  0x27   :  { %p552_p4 = pnand %p550_p3, %p547_p2 }
  0x29   :  { %555 = shalt.err (!%p552_p4)
}
  0x2a   :  { %s556_s24 = scalar_lea.vmem %s42_s15, 1024  ;;  %p561_p6 = scmp.lt.s32.totalorder %s42_s15, %s42_s15 }
  0x2b   :  { %p557_p5 = scmp.ne.s32.totalorder %s42_s15, %s556_s24  ;;  %p562_p7 = scmp.lt.s32.totalorder %s556_s24, %s556_s24 }
  0x2d   :  { %p563_p8 = por %p562_p7, %p561_p6 }
  0x2f   :  { %p564_p9 = pnand %p563_p8, %p557_p5 }
  0x31   :  { %567 = shalt.err (!%p564_p9)
}
  0x32   :  { %47 = dma.hbm_to_vmem [thread:$0]  %s707_s2, 1024, %s42_s15, [#allocation6], %s598_s27, %s598_s27, %s599_s28  }
  0x33   :  { %590 = dma.done.wait [#allocation3], 128  }
  0x34   :  { %591 = vsyncadd [#allocation3], 4294967168 }
  0x35   :  { %592 = dma.done.wait [#allocation6], 2048  }
  0x36   :  { %593 = vsyncadd [#allocation6], 4294965248  ;;  %v601_v0 = vmov 0.0   ;;  %vm602_vm0 = vmmov 0   ;;  %v477_v1 = vld [vmem:[#allocation5] sm:$0xff]   ;;  %v478_v2 = vld [vmem:[#allocation5 + $0x8] sm:$0xff]   ;;  %v203_v44 = vlaneseq }
  0x37   :  { %427 = vmatprep.subr.bf16.mxu0 %v601_v0  ;;  %443 = vmatprep.mubr.msk.bf16.mxu0 %vm602_vm0, %v601_v0  ;;  %v479_v3 = vld [vmem:[#allocation5 + $0x10] sm:$0xff]   ;;  %v480_v4 = vld [vmem:[#allocation5 + $0x18] sm:$0xff]   ;;  %v481_v5 = vld [vmem:[#allocation5 + $0x20] sm:$0xff]  }
  0x38   :  { %447 = vmatprep.subr.bf16.mxu1 %v601_v0  ;;  %463 = vmatprep.mubr.msk.bf16.mxu1 %vm602_vm0, %v601_v0  ;;  %v482_v6 = vld [vmem:[#allocation5 + $0x28] sm:$0xff]   ;;  %v483_v7 = vld [vmem:[#allocation5 + $0x30] sm:$0xff]   ;;  %v484_v8 = vld [vmem:[#allocation5 + $0x38] sm:$0xff]   ;;  %v683_v45 = vshrl.u32 %v203_v44, 7 }
  0x39   :  { %428 = vmatpush3.bf16.msra.mxu0 %v477_v1  ;;  %v485_v9 = vld [vmem:[#allocation2] sm:$0xff]   ;;  %v486_v10 = vld [vmem:[#allocation7] sm:$0xff]   ;;  %v487_v11 = vld [vmem:[#allocation7 + $0x8] sm:$0xff]  }
  0x3a   :  { %429 = vmatprep.subr.bf16.mxu0 %v601_v0  ;;  %448 = vmatpush3.bf16.msra.mxu1 %v486_v10  ;;  %v488_v12 = vld [vmem:[#allocation7 + $0x10] sm:$0xff]   ;;  %v489_v13 = vld [vmem:[#allocation7 + $0x18] sm:$0xff]   ;;  %v490_v14 = vld [vmem:[#allocation7 + $0x20] sm:$0xff]   ;;  %v205_v47 = vsub.s32 0, %v683_v45  ;;  %v211_v55 = vsub.s32 1, %v683_v45 }
  0x3b   :  { %449 = vmatprep.subr.bf16.mxu1 %v601_v0  ;;  %v491_v15 = vld [vmem:[#allocation7 + $0x28] sm:$0xff]   ;;  %v492_v16 = vld [vmem:[#allocation7 + $0x30] sm:$0xff]   ;;  %v493_v17 = vld [vmem:[#allocation7 + $0x38] sm:$0xff]  }
  0x3c   :  { %v60_v46 = vld [vmem:[%s708_s3] sm:$0x1f]  ;;  %s603_s3 = smov [#allocation8]  }
  0x3d   :  { %430 = vmatpush3.bf16.msra.mxu0 %v478_v2  ;;  %s379_s26 = sshll.u32 %s603_s3, 4  ;;  %s380_s26 = int_to_ptr.vmem [resolvable:$true] %s379_s26 }
  0x3e   :  { %431 = vmatprep.subr.bf16.mxu0 %v601_v0  ;;  %450 = vmatpush3.bf16.msra.mxu1 %v487_v11  ;;  %s568_s27 = scalar_lea.vmem %s380_s26, 256  ;;  %p573_p11 = scmp.lt.s32.totalorder %s380_s26, %s380_s26 }
  0x3f   :  { %451 = vmatprep.subr.bf16.mxu1 %v601_v0  ;;  %p569_p10 = scmp.ne.s32.totalorder %s380_s26, %s568_s27  ;;  %p574_p12 = scmp.lt.s32.totalorder %s568_s27, %s568_s27 }
  0x41   :  { %432 = vmatpush3.bf16.msra.mxu0 %v479_v3  ;;  %p575_p13 = por %p574_p12, %p573_p11 }
  0x42   :  { %433 = vmatprep.subr.bf16.mxu0 %v601_v0  ;;  %452 = vmatpush3.bf16.msra.mxu1 %v488_v12 }
  0x43   :  { %453 = vmatprep.subr.bf16.mxu1 %v601_v0  ;;  %p576_p0 = pnand %p575_p13, %p569_p10 }
  0x45   :  { %434 = vmatpush3.bf16.msra.mxu0 %v480_v4 }
  0x46   :  { %435 = vmatprep.subr.bf16.mxu0 %v601_v0  ;;  %454 = vmatpush3.bf16.msra.mxu1 %v489_v13 }
  0x47   :  { %455 = vmatprep.subr.bf16.mxu1 %v601_v0 }
  0x49   :  { %436 = vmatpush3.bf16.msra.mxu0 %v481_v5 }
  0x4a   :  { %437 = vmatprep.subr.bf16.mxu0 %v601_v0  ;;  %456 = vmatpush3.bf16.msra.mxu1 %v490_v14 }
  0x4b   :  { %457 = vmatprep.subr.bf16.mxu1 %v601_v0 }
  0x4d   :  { %438 = vmatpush3.bf16.msra.mxu0 %v482_v6 }
  0x4e   :  { %439 = vmatprep.subr.bf16.mxu0 %v601_v0  ;;  %458 = vmatpush3.bf16.msra.mxu1 %v491_v15 }
  0x4f   :  { %459 = vmatprep.subr.bf16.mxu1 %v601_v0 }
  0x51   :  { %440 = vmatpush3.bf16.msra.mxu0 %v483_v7 }
  0x52   :  { %441 = vmatprep.subr.bf16.mxu0 %v601_v0  ;;  %460 = vmatpush3.bf16.msra.mxu1 %v492_v16 }
  0x53   :  { %461 = vmatprep.subr.bf16.mxu1 %v601_v0 }
  0x55   :  { %442 = vmatpush3.bf16.msra.mxu0 %v484_v8 }
  0x56   :  { %462 = vmatpush3.bf16.msra.mxu1 %v493_v17 }
  0x58   :  { %444 = vmatmul.mubr.bf16.vlgmr.msra.gmra.mrb[0].mxu0 %v485_v9 }
 0x12b   :  { %v167_v18 = vpop.f32.mrb[0].mxu0 }
 0x12c   :  { %v445_v19 = vpop.f32.mrb[1].mxu0  ;;  %v182_v21 = vmul.f32 %v167_v18, %v167_v18 }
 0x12d   :  { %v170_v20 = vpop.f32.mrb[2].mxu0 }
 0x12e   :  { %v174_v22 = vadd.f32 %v170_v20, %v167_v18  ;;  %v183_v23 = vmul.f32 %v170_v20, %v170_v20  ;;  %v446_v24 = vpop.f32.mrb[3].mxu0 }
 0x130   :  { %v175_v25 = vrot.slane %v174_v22, 4  ;;  %v184_v26 = vadd.f32 %v183_v23, %v182_v21 }
 0x132   :  { %v176_v27 = vadd.f32 %v175_v25, %v174_v22  ;;  %v185_v28 = vrot.slane %v184_v26, 4  ;;  %v354_v25 = vsub.s32 2, %v683_v45 }
 0x134   :  { %v177_v29 = vrot.slane %v176_v27, 2  ;;  %v186_v30 = vadd.f32 %v185_v28, %v184_v26 }
 0x136   :  { %v178_v31 = vadd.f32 %v177_v29, %v176_v27  ;;  %v187_v32 = vrot.slane %v186_v30, 2 }
 0x138   :  { %v179_v33 = vrot.slane %v178_v31, 1  ;;  %v188_v34 = vadd.f32 %v187_v32, %v186_v30 }
 0x13a   :  { %v180_v35 = vadd.f32 %v179_v33, %v178_v31  ;;  %v189_v36 = vrot.slane %v188_v34, 1  ;;  %v360_v33 = vsub.s32 3, %v683_v45 }
 0x13c   :  { %v181_v37 = vmul.f32 0.0625, %v180_v35  ;;  %v190_v38 = vadd.f32 %v189_v36, %v188_v34 }
 0x13e   :  { %v191_v39 = vmul.f32 0.0625, %v190_v38  ;;  %v192_v40 = vmul.f32 %v181_v37, %v181_v37  ;;  %v368_v38 = vsub.s32 4, %v683_v45 }
 0x140   :  { %v193_v41 = vsub.f32 %v191_v39, %v192_v40  ;;  %v369_v39 = vrot.slane %v60_v46, %v368_v38 }
 0x142   :  { %v194_v42 = vmax.f32 %v193_v41, 0.0 }
 0x144   :  { %v195_v43 = vadd.f32 1e-05, %v194_v42 }
 0x146   :  { %494 = vrsqrt.f32 %v195_v43 }
 0x150   :  { %v495_v48 = vpop.eup %494 }
 0x151   :  { %v197_v49 = vmul.f32 %v495_v48, %v60_v46 }
 0x153   :  { %v198_v50 = vmul.f32 %v197_v49, %v181_v37  ;;  %v206_v51 = vrot.slane %v197_v49, %v205_v47 }
 0x155   :  { %v200_v52 = vrot.slane %v198_v50, 7  ;;  %v207_v53 = vmul.f32 %v206_v51, %v167_v18  ;;  %v208_v54 = vmul.f32 %v206_v51, %v170_v20 }
 0x157   :  { %v202_v56 = vsub.f32 %v60_v46, %v200_v52 }
 0x159   :  { %v212_v57 = vrot.slane %v202_v56, %v211_v55 }
 0x15b   :  { %v214_v58 = vadd.f32 %v212_v57, %v208_v54  ;;  %v213_v59 = vadd.f32 %v212_v57, %v207_v53 }
 0x15d   :  { %v215_v60 = vmax.f32 %v213_v59, 0.0  ;;  %v216_v61 = vmax.f32 %v214_v58, 0.0 }
 0x15f   :  { %v217_v62 = vpack.c.bf16 %v216_v61, %v215_v60 }
 0x161   :  { %464 = vmatmul.mubr.bf16.vlgmr.msra.gmra.mrb[0].mxu1 %v217_v62 }
 0x234   :  { %v316_v63 = vpop.f32.mrb[0].mxu1 }
 0x235   :  { %v465_v0 = vpop.f32.mrb[1].mxu1  ;;  %v331_v2 = vmul.f32 %v316_v63, %v316_v63 }
 0x236   :  { %v319_v1 = vpop.f32.mrb[2].mxu1 }
 0x237   :  { %v323_v3 = vadd.f32 %v319_v1, %v316_v63  ;;  %v332_v4 = vmul.f32 %v319_v1, %v319_v1  ;;  %v466_v5 = vpop.f32.mrb[3].mxu1 }
 0x239   :  { %v324_v6 = vrot.slane %v323_v3, 4  ;;  %v333_v7 = vadd.f32 %v332_v4, %v331_v2 }
 0x23b   :  { %v325_v8 = vadd.f32 %v324_v6, %v323_v3  ;;  %v334_v9 = vrot.slane %v333_v7, 4 }
 0x23d   :  { %v326_v10 = vrot.slane %v325_v8, 2  ;;  %v335_v11 = vadd.f32 %v334_v9, %v333_v7 }
 0x23f   :  { %v327_v12 = vadd.f32 %v326_v10, %v325_v8  ;;  %v336_v13 = vrot.slane %v335_v11, 2 }
 0x241   :  { %v328_v14 = vrot.slane %v327_v12, 1  ;;  %v337_v15 = vadd.f32 %v336_v13, %v335_v11 }
 0x243   :  { %v329_v16 = vadd.f32 %v328_v14, %v327_v12  ;;  %v338_v17 = vrot.slane %v337_v15, 1 }
 0x245   :  { %v330_v18 = vmul.f32 0.0625, %v329_v16  ;;  %v339_v19 = vadd.f32 %v338_v17, %v337_v15 }
 0x247   :  { %v340_v20 = vmul.f32 0.0625, %v339_v19  ;;  %v341_v21 = vmul.f32 %v330_v18, %v330_v18 }
 0x249   :  { %v342_v22 = vsub.f32 %v340_v20, %v341_v21 }
 0x24b   :  { %v343_v23 = vmax.f32 %v342_v22, 0.0 }
 0x24d   :  { %v344_v24 = vadd.f32 1e-05, %v343_v23 }
 0x24f   :  { %496 = vrsqrt.f32 %v344_v24 }
 0x259   :  { %v497_v26 = vpop.eup %496 }
 0x25a   :  { %v346_v27 = vmul.f32 %v497_v26, %v60_v46 }
 0x25c   :  { %v347_v28 = vmul.f32 %v346_v27, %v330_v18  ;;  %v355_v29 = vrot.slane %v346_v27, %v354_v25 }
 0x25e   :  { %v349_v30 = vrot.slane %v347_v28, 7  ;;  %v356_v31 = vmul.f32 %v355_v29, %v316_v63  ;;  %v357_v32 = vmul.f32 %v355_v29, %v319_v1 }
 0x260   :  { %v351_v34 = vsub.f32 %v60_v46, %v349_v30 }
 0x262   :  { %v361_v35 = vrot.slane %v351_v34, %v360_v33 }
 0x264   :  { %v362_v36 = vadd.f32 %v361_v35, %v356_v31  ;;  %v363_v37 = vadd.f32 %v361_v35, %v357_v32 }
 0x266   :  { %498 = vtanh.f32 %v362_v36 }
 0x267   :  { %500 = vtanh.f32 %v363_v37 }
 0x270   :  { %v499_v40 = vpop.eup %498 }
 0x271   :  { %v501_v41 = vpop.eup %500  ;;  %v370_v42 = vmul.f32 %v499_v40, %v369_v39 }
 0x272   :  { %v371_v43 = vmul.f32 %v501_v41, %v369_v39 }
 0x273   :  { %372 = vst [vmem:[#allocation8] sm:$0xff] %v370_v42 }
 0x274   :  { %373 = vst [vmem:[#allocation8 + $0x8] sm:$0xff] %v371_v43 }
 0x275   :  { %579 = shalt.err (!%p576_p0)
}
 0x276   :  { %s580_s30 = scalar_lea.hbm %s709_s4, 256 }
 0x277   :  { %p581_p1 = scmp.ne.s32.totalorder %s709_s4, %s580_s30  ;;  %p584_p2 = scmp.lt.u32.totalorder %s580_s30, %s709_s4 }
 0x279   :  { %p586_p3 = pnand %p584_p2, %p581_p1 }
 0x27b   :  { %589 = shalt.err (!%p586_p3)
}
 0x27c   :  { %s604_s9 = smov 128   ;;  %s605_s10 = smov 8  }
 0x27d   :  { %385 = dma.vmem_to_hbm [thread:$0]  %s380_s26, 256, %s709_s4, [#allocation4], %s604_s9, %s604_s9, %s605_s10  }
 0x27e   :  { %594 = dma.done.wait [#allocation4], 256  }
 0x27f   :  { %595 = vsyncadd [#allocation4], 4294967040 }
 0x280   :  { %389 = vsyncpa [#allocation3], 1 }
 0x281   :  { %390 = vsyncpa [#allocation6], 1 }
 0x282   :  { %391 = vsyncpa [#allocation4], 1 }

</bundles_post_ra>
